<compile_context>
chip_gen: v7x
topology: tpu7x:2x2x1
jax: 0.10.0
libtpu: 0.0.40
codegen_flags: <defaults>
</compile_context>

<pallas_src>
import jax
import jax.numpy as jnp
from jax.experimental import pallas as pl
from jax.experimental.pallas import tpu as pltpu


def _round_up(x: int, m: int) -> int:
    return ((x + m - 1) // m) * m


_SMALL_BATCH = 512   # at/below this, a single gridless invocation is cheapest
_BIG_TILE = 2048     # target batch tile for the training (replay-buffer) path


def qnetwork_kernel(x_ref, w1_ref, b1_ref, w2_ref, b2_ref, out_ref):
    # x_ref:  (TB, S)   w1_ref: (S, Hp)   b1_ref: (1, Hp)
    # w2_ref: (Hp, A)   b2_ref: (1, A)    out_ref: (TB, A)
    x = x_ref[...]
    h = jnp.dot(x, w1_ref[...], preferred_element_type=jnp.float32) + b1_ref[...]
    h = jnp.maximum(h, 0.0)  # ReLU, kept in f32
    out = jnp.dot(h, w2_ref[...], preferred_element_type=jnp.float32) + b2_ref[...]
    out_ref[...] = out.astype(out_ref.dtype)


def prepare_qnetwork_params(w1, b1, w2, b2):
    """One-time param prep (outside the hot path): cast to f32, pad hidden dim to
    128 lanes so the intermediate activation is lane-dense.  Output dim stays at A
    (narrow store; no write blow-up)."""
    S, H = w1.shape
    A = w2.shape[1]
    Hp = _round_up(H, 128)
    w1p = jnp.pad(w1.astype(jnp.float32), ((0, 0), (0, Hp - H)))
    b1p = jnp.pad(jnp.reshape(b1, (1, -1)).astype(jnp.float32), ((0, 0), (0, Hp - H)))
    w2p = jnp.pad(w2.astype(jnp.float32), ((0, Hp - H), (0, 0)))
    b2p = jnp.reshape(b2, (1, -1)).astype(jnp.float32)
    del S, A
    return w1p, b1p, w2p, b2p


@jax.jit
def qnetwork_forward(x, w1p, b1p, w2p, b2p):
    """Fused forward pass: relu(x @ W1 + b1) @ W2 + b2 -> (B, A) float32.

    Expects params already prepared by prepare_qnetwork_params.
    """
    B, S = x.shape
    Hp = w1p.shape[1]
    A = w2p.shape[1]
    x = x.astype(jnp.float32)

    cost = pl.CostEstimate(
        flops=2 * B * S * Hp + 2 * B * Hp * A,
        transcendentals=0,
        bytes_accessed=4 * (B * S + B * A + S * Hp + Hp + Hp * A + A),
    )

    if B <= _SMALL_BATCH:
        # Action-selection path: single gridless invocation, full-array VMEM
        # blocks, no padding of the batch, narrow (B, A) output.
        vmem = pl.BlockSpec(memory_space=pltpu.MemorySpace.VMEM)
        return pl.pallas_call(
            qnetwork_kernel,
            out_shape=jax.ShapeDtypeStruct((B, A), jnp.float32),
            in_specs=[vmem, vmem, vmem, vmem, vmem],
            out_specs=vmem,
            cost_estimate=cost,
        )(x, w1p, b1p, w2p, b2p)

    # Training path: tile the batch axis.  Keep >= 2 tiles so v7x megacore can
    # split the "parallel" axis; otherwise maximize the tile (per-grid-step
    # overhead dominates this tiny, memory-bound network).
    n_tiles = max(2, pl.cdiv(B, _BIG_TILE))
    tile_b = _round_up(pl.cdiv(B, n_tiles), 8)
    grid = (pl.cdiv(B, tile_b),)  # ragged last block handled by Pallas masking

    return pl.pallas_call(
        qnetwork_kernel,
        out_shape=jax.ShapeDtypeStruct((B, A), jnp.float32),
        grid_spec=pltpu.PrefetchScalarGridSpec(
            num_scalar_prefetch=0,
            grid=grid,
            in_specs=[
                pl.BlockSpec((tile_b, S), lambda i: (i, 0)),
                pl.BlockSpec((S, Hp), lambda i: (0, 0)),
                pl.BlockSpec((1, Hp), lambda i: (0, 0)),
                pl.BlockSpec((Hp, A), lambda i: (0, 0)),
                pl.BlockSpec((1, A), lambda i: (0, 0)),
            ],
            out_specs=pl.BlockSpec((tile_b, A), lambda i: (i, 0)),
        ),
        compiler_params=pltpu.CompilerParams(
            dimension_semantics=("parallel",),
        ),
        cost_estimate=cost,
    )(x, w1p, b1p, w2p, b2p)


def init_qnetwork_params(key, state_size, action_size, n_first=20):
    """Deterministic init mimicking nn.Linear default (U(-1/sqrt(fan_in), ...)).
    Stored pre-transposed: [in_features, out_features]."""
    k1, k2, k3, k4 = jax.random.split(key, 4)
    bound1 = 1.0 / jnp.sqrt(state_size)
    bound2 = 1.0 / jnp.sqrt(n_first)
    w1 = jax.random.uniform(k1, (state_size, n_first), jnp.float32, -bound1, bound1)
    b1 = jax.random.uniform(k2, (1, n_first), jnp.float32, -bound1, bound1)
    w2 = jax.random.uniform(k3, (n_first, action_size), jnp.float32, -bound2, bound2)
    b2 = jax.random.uniform(k4, (1, action_size), jnp.float32, -bound2, bound2)
    return w1, b1, w2, b2


if __name__ == "__main__":
    key = jax.random.PRNGKey(0)
    state_size = 8       # small synthetic state dim (Banana env would be 37)
    action_size = 4

    pkey, xkey, xkey2 = jax.random.split(key, 3)
    w1, b1, w2, b2 = init_qnetwork_params(pkey, state_size, action_size)
    params = prepare_qnetwork_params(w1, b1, w2, b2)  # one-time prep (hoisted)

    def ref_fwd(xin):
        return jnp.maximum(xin @ w1 + b1, 0.0) @ w2 + b2

    # --- Small-batch (action-selection) path: gridless kernel, no padding ---
    batch = 2
    x = jax.random.normal(xkey, (batch, state_size), jnp.float32)
    out = jax.block_until_ready(qnetwork_forward(x, *params))
    assert out.shape == (batch, action_size)
    assert jnp.allclose(out, ref_fwd(x), atol=1e-5, rtol=1e-5)

    # --- Large-batch (training) path: batch-tiled parallel grid, ragged last tile ---
    big_batch = 1000  # not a multiple of the tile -> exercises masked last block
    xb = jax.random.normal(xkey2, (big_batch, state_size), jnp.float32)
    outb = jax.block_until_ready(qnetwork_forward(xb, *params))
    assert outb.shape == (big_batch, action_size)
    assert jnp.allclose(outb, ref_fwd(xb), atol=1e-4, rtol=1e-4)

    print("KERNEL_OK")
</pallas_src>

<mosaic_0001>
module attributes {stable_mosaic.version = 11 : i64} {
  func.func @qnetwork_kernel(%arg0: memref<2x8xf32, #tpu.memory_space<vmem>>, %arg1: memref<8x128xf32, #tpu.memory_space<vmem>>, %arg2: memref<1x128xf32, #tpu.memory_space<vmem>>, %arg3: memref<128x4xf32, #tpu.memory_space<vmem>>, %arg4: memref<1x4xf32, #tpu.memory_space<vmem>>, %arg5: memref<2x4xf32, #tpu.memory_space<vmem>>) attributes {dimension_semantics = [], scalar_prefetch = 0 : i64, scratch_operands = 0 : i64, tpu.core_type = #tpu.core_type<tc>} {
    %c0 = arith.constant 0 : index
    %c0_0 = arith.constant 0 : index
    %0 = vector.load %arg0[%c0, %c0_0] : memref<2x8xf32, #tpu.memory_space<vmem>>, vector<2x8xf32>
    %c0_1 = arith.constant 0 : index
    %c0_2 = arith.constant 0 : index
    %1 = vector.load %arg1[%c0_1, %c0_2] : memref<8x128xf32, #tpu.memory_space<vmem>>, vector<8x128xf32>
    %cst = arith.constant dense<0.000000e+00> : vector<2x128xf32>
    %2 = tpu.matmul %0, %1, %cst {dimension_numbers = #tpu.dot_dimension_numbers<[1], [0], [0], [1], [0, 0, 1, 1], [], []>} : vector<2x8xf32>, vector<8x128xf32>, vector<2x128xf32> -> vector<2x128xf32>
    %c0_3 = arith.constant 0 : index
    %c0_4 = arith.constant 0 : index
    %3 = vector.load %arg2[%c0_3, %c0_4] : memref<1x128xf32, #tpu.memory_space<vmem>>, vector<1x128xf32>
    %4 = vector.broadcast %3 : vector<1x128xf32> to vector<2x128xf32>
    %5 = arith.addf %2, %4 : vector<2x128xf32>
    %cst_5 = arith.constant 0.000000e+00 : f32
    %6 = vector.broadcast %cst_5 : f32 to vector<2x128xf32>
    %7 = arith.maximumf %5, %6 : vector<2x128xf32>
    %c0_6 = arith.constant 0 : index
    %c0_7 = arith.constant 0 : index
    %8 = vector.load %arg3[%c0_6, %c0_7] : memref<128x4xf32, #tpu.memory_space<vmem>>, vector<128x4xf32>
    %cst_8 = arith.constant dense<0.000000e+00> : vector<2x4xf32>
    %9 = tpu.matmul %7, %8, %cst_8 {dimension_numbers = #tpu.dot_dimension_numbers<[1], [0], [0], [1], [0, 0, 1, 1], [], []>} : vector<2x128xf32>, vector<128x4xf32>, vector<2x4xf32> -> vector<2x4xf32>
    %c0_9 = arith.constant 0 : index
    %c0_10 = arith.constant 0 : index
    %10 = vector.load %arg4[%c0_9, %c0_10] : memref<1x4xf32, #tpu.memory_space<vmem>>, vector<1x4xf32>
    %11 = vector.broadcast %10 : vector<1x4xf32> to vector<2x4xf32>
    %12 = arith.addf %9, %11 : vector<2x4xf32>
    %c0_11 = arith.constant 0 : index
    %c0_12 = arith.constant 0 : index
    %13 = vector.load %arg5[%c0_11, %c0_12] : memref<2x4xf32, #tpu.memory_space<vmem>>, vector<2x4xf32>
    tpu.vector_store %arg5[%c0_11, %c0_12], %12 {strides = array<i32>} : memref<2x4xf32, #tpu.memory_space<vmem>>, vector<2x4xf32>,
    return
  }
}

</mosaic_0001>

<bundles_post_ra>
// kernel: qnetwork_forward.1
= control target key start
LH: loop header
LB: loop body
LE: loop exit
PB: predicated region body
PF: predicated region fallthrough
CT: control target
= control target key end

     0   :  { %vm30_vm0 = vcmask 64512   ;;  %v328_v2 = vmov 0.0   ;;  %vm329_vm1 = vmmov 0   ;;  %v330_v6 = vmov 0.0|0.0   ;;  %s434_s0 = inlined_call_operand.vmem [shape: f32[2,8], index: 0, kind: input, shape index: {}]   ;;  %s435_s1 = inlined_call_operand.vmem [shape: f32[8,128], index: 1, kind: input, shape index: {}]   ;;  %s436_s2 = inlined_call_operand.vmem [shape: f32[1,128], index: 2, kind: input, shape index: {}]   ;;  %s437_s3 = inlined_call_operand.vmem [shape: f32[128,4], index: 3, kind: input, shape index: {}]   ;;  %s438_s4 = inlined_call_operand.vmem [shape: f32[1,4], index: 4, kind: input, shape index: {}]   ;;  %s439_s5 = inlined_call_operand.hbm [shape: f32[2,4], index: 5, kind: output, shape index: {}]  }
   0x1   :  { %v22_v0 = vld [vmem:[%s435_s1] sm:$0xff]  ;;  %236 = vmatprep.subr.mxu0 %v328_v2  ;;  %238 = vmatprep.mubr.msk.f32.mxu0 %vm329_vm1, %v328_v2  ;;  %v106_v4 = vld [vmem:[%s437_s3 + $0x8] sm:$0xff]  ;;  %v107_v5 = vld [vmem:[%s437_s3 + $0x10] sm:$0xff] }
   0x2   :  { %v21_v1 = vld [vmem:[%s434_s0] sm:$0x3]  ;;  %237 = vmatpush3.msra.mxu0 %v22_v0  ;;  %276 = vmatprep.subr.bf16.mxu1 %v330_v6  ;;  %v108_v8 = vld [vmem:[%s437_s3 + $0x18] sm:$0xff]  ;;  %v110_v11 = vld [vmem:[%s437_s3 + $0x28] sm:$0xff] }
   0x3   :  { %v105_v3 = vld [vmem:[%s437_s3] sm:$0xff]  ;;  %239 = vmatmul.mubr.msk.f32.vlgmr.msra.gmra.mrb[0].mxu0 %vm30_vm0, %v21_v1  ;;  %273 = vmatprep.mubr.msk.f32.mxu1 %vm329_vm1, %v328_v2  ;;  %v280_v9 = vpack.c.bf16 %v108_v8, %v107_v5 }
   0x4   :  { %v277_v7 = vpack.c.bf16 %v106_v4, %v105_v3  ;;  %v109_v10 = vld [vmem:[%s437_s3 + $0x20] sm:$0xff] }
   0x6   :  { %278 = vmatpush3.bf16.msra.mxu1 %v277_v7 }
   0x7   :  { %279 = vmatprep.subr.bf16.mxu1 %v330_v6 }
   0x8   :  { %10 = vsyncpa [#allocation3], 0  ;;  %v283_v12 = vpack.c.bf16 %v110_v11, %v109_v10  ;;  %v111_v13 = vld [vmem:[%s437_s3 + $0x30] sm:$0xff]  ;;  %v112_v14 = vld [vmem:[%s437_s3 + $0x38] sm:$0xff]  ;;  %s331_s29 = smov [#allocation2]   ;;  %vm198_vm2 = vcmask 25600  }
   0x9   :  { %v286_v15 = vpack.c.bf16 %v112_v14, %v111_v13  ;;  %v113_v16 = vld [vmem:[%s437_s3 + $0x40] sm:$0xff]  ;;  %v114_v17 = vld [vmem:[%s437_s3 + $0x48] sm:$0xff]  ;;  %v115_v19 = vld [vmem:[%s437_s3 + $0x50] sm:$0xff]  ;;  %s206_s30 = sshll.u32 %s331_s29, 4  ;;  %s207_s30 = int_to_ptr.vmem [resolvable:$true] %s206_s30 }
   0xa   :  { %281 = vmatpush3.bf16.msra.mxu1 %v280_v9  ;;  %v289_v18 = vpack.c.bf16 %v114_v17, %v113_v16  ;;  %v116_v20 = vld [vmem:[%s437_s3 + $0x58] sm:$0xff]  ;;  %v117_v22 = vld [vmem:[%s437_s3 + $0x60] sm:$0xff]  ;;  %v118_v23 = vld [vmem:[%s437_s3 + $0x68] sm:$0xff]  ;;  %p309_p1 = scmp.lt.s32.totalorder %s207_s30, %s207_s30 }
   0xb   :  { %282 = vmatprep.subr.bf16.mxu1 %v330_v6  ;;  %v292_v21 = vpack.c.bf16 %v116_v20, %v115_v19  ;;  %v295_v24 = vpack.c.bf16 %v118_v23, %v117_v22  ;;  %v119_v25 = vld [vmem:[%s437_s3 + $0x70] sm:$0xff]  ;;  %v120_v26 = vld [vmem:[%s437_s3 + $0x78] sm:$0xff]  ;;  %v214_v28 = vld [vmem:[%s436_s2] ss:$0 sm:$0xff]  ;;  %s304_s3 = scalar_lea.vmem %s207_s30, 32 }
   0xc   :  { %v298_v27 = vpack.c.bf16 %v120_v26, %v119_v25  ;;  %v216_v33 = vld [vmem:[%s438_s4] ss:$0 sm:$0xff]  ;;  %p305_p0 = scmp.ne.s32.totalorder %s207_s30, %s304_s3  ;;  %p310_p2 = scmp.lt.s32.totalorder %s304_s3, %s304_s3 }
   0xe   :  { %284 = vmatpush3.bf16.msra.mxu1 %v283_v12  ;;  %p311_p3 = por %p310_p2, %p309_p1 }
   0xf   :  { %285 = vmatprep.subr.bf16.mxu1 %v330_v6 }
  0x10   :  { %p312_p4 = pnand %p311_p3, %p305_p0 }
  0x12   :  { %287 = vmatpush3.bf16.msra.mxu1 %v286_v15 }
  0x13   :  { %288 = vmatprep.subr.bf16.mxu1 %v330_v6 }
  0x16   :  { %290 = vmatpush3.bf16.msra.mxu1 %v289_v18 }
  0x17   :  { %291 = vmatprep.subr.bf16.mxu1 %v330_v6 }
  0x1a   :  { %293 = vmatpush3.bf16.msra.mxu1 %v292_v21 }
  0x1b   :  { %294 = vmatprep.subr.bf16.mxu1 %v330_v6 }
  0x1e   :  { %296 = vmatpush3.bf16.msra.mxu1 %v295_v24 }
  0x1f   :  { %297 = vmatprep.subr.bf16.mxu1 %v330_v6 }
  0x22   :  { %299 = vmatpush3.bf16.msra.mxu1 %v298_v27 }
  0xd6   :  { %v100_v29 = vpop.f32.mrb[0].mxu0 }
  0xd7   :  { %v101_v30 = vadd.f32 %v214_v28, %v100_v29  ;;  %v240_v31 = vpop.f32.mrb[1].mxu0 }
  0xd9   :  { %v104_v32 = vmax.f32 %v101_v30, 0.0 }
  0xdb   :  { %274 = vmatmul.mubr.f32.vlgmr.msra.gmra.mrb[0].mxu1 %v104_v32 }
 0x1ae   :  { %v194_v34 = vpop.f32.mrb[0].mxu1 }
 0x1af   :  { %v195_v35 = vadd.f32 %v216_v33, %v194_v34  ;;  %v275_v36 = vpop.f32.mrb[1].mxu1 }
 0x1b1   :  { %199 = vst.msk [vmem:[#allocation2] sm:$0x3] %vm198_vm2, %v195_v35 }
 0x1b2   :  { %315 = shalt.err (!%p312_p4)
}
 0x1b3   :  { %s316_s7 = scalar_lea.hbm %s439_s5, 32 }
 0x1b4   :  { %p317_p5 = scmp.ne.s32.totalorder %s439_s5, %s316_s7  ;;  %p320_p6 = scmp.lt.u32.totalorder %s316_s7, %s439_s5 }
 0x1b6   :  { %p322_p7 = pnand %p320_p6, %p317_p5 }
 0x1b8   :  { %325 = shalt.err (!%p322_p7)
}
 0x1b9   :  { %209 = dma.vmem_to_hbm [thread:$0]  %s207_s30, 32, %s439_s5, [#allocation3]  }
 0x1ba   :  { %326 = dma.done.wait [#allocation3], 32  }
 0x1bb   :  { %327 = vsyncadd [#allocation3], 4294967264 }
 0x1bc   :  { %213 = vsyncpa [#allocation3], 1 }

</bundles_post_ra>
